<compile_context>
chip_gen: v6e
topology: v6e:2x2x1
jax: 0.10.0
libtpu: 0.0.40
codegen_flags: <defaults>
</compile_context>

<pallas_src>
import jax
import jax.numpy as jnp
from jax import lax
from jax.experimental import pallas as pl
from jax.experimental.pallas import tpu as pltpu


def spgnn_kernel(ew_ref, idx_ref, x_ref, out_ref):
    K = ew_ref.shape[0]          # edge_num (size of the edge_weight parameter)
    H, N = x_ref.shape           # hidden_size, node_num (== label_num)
    E = idx_ref.shape[1]         # number of sampled edges
    Np = out_ref.shape[1]        # node_num padded to a lane-dense multiple of 128

    idx = idx_ref[...]           # (3, E) int32 : [edge2id ; src ; tgt]
    e2id = idx[0:1, :]           # (1, E)
    src = idx[1:2, :]            # (1, E)
    tgt = idx[2:3, :]            # (1, E)

    # --- w = edge_weight[edge2id] : masked sublane-sum (VPU select + XLU) ----
    k_iota = lax.broadcasted_iota(jnp.int32, (K, E), 0)
    w = jnp.sum(jnp.where(k_iota == e2id, ew_ref[...], 0.0),
                axis=0, keepdims=True)                             # (1, E)

    # --- numerically stable exp over edges (EUP) -----------------------------
    exp_v = jnp.exp(w - jnp.max(w))                                # (1, E)

    # --- one-hot edge masks ---------------------------------------------------
    tgt_1h = (lax.broadcasted_iota(jnp.int32, (N, E), 0) == tgt
              ).astype(jnp.float32)                                # (N, E)  row = target node
    src_1h = (lax.broadcasted_iota(jnp.int32, (Np, E), 0) == src
              ).astype(jnp.float32)                                # (Np, E) row = source node

    # --- message matrix M[t, s] = sum_{e: tgt==t, src==s} exp_v[e] -----------
    # Single MXU contraction over E (A @ B^T form: both operands contract on
    # their last dim, same pattern as q @ k^T in flash attention).
    msg = lax.dot_general(tgt_1h * exp_v, src_1h,
                          dimension_numbers=(((1,), (1,)), ((), ())),
                          preferred_element_type=jnp.float32)      # (N, Np)

    # Per-source softmax denominator == column sums of msg (sublane reduce),
    # exact reciprocal (review correctness note: avoid approx recip + 1e-10).
    inv_denom = 1.0 / (jnp.sum(msg, axis=0, keepdims=True) + 1e-10)  # (1, Np)

    # out = x @ M with the softmax normalisation folded in as a column scale.
    out = jnp.dot(x_ref[...], msg, preferred_element_type=jnp.float32)  # (H, Np)
    out_ref[...] = (out * inv_denom).astype(out_ref.dtype)

    # NOTE: for production CausalTAD sizes (N ~ hundreds, E ~ thousands+), tile
    # the E axis with an "arbitrary" grid dimension, keep msg/out as resident
    # accumulators (pl.when init/finalize), turn max(w) into a global two-pass
    # max, and consider bf16 one-hot matmul operands; kept un-tiled f32 here
    # because the demo problem fits trivially in VMEM and stays bit-accurate.


def spgnn_forward(x, edge_list, edge2id, edge_weight):
    """x: (hidden_size, label_num) f32, edge_list: (2, E) int, edge2id: (E,) int,
    edge_weight: (edge_num,) f32.  Returns (hidden_size, label_num) f32."""
    H, N = x.shape
    E = edge_list.shape[1]
    K = edge_weight.shape[0]
    n_pad = ((N + 127) // 128) * 128          # lane-dense output width

    # Pack the three index vectors into one int32 DMA; edge_weight as a column
    # so the in-kernel gather is a pure lane-broadcast + sublane reduce.
    idx = jnp.concatenate(
        [edge2id.reshape(1, E), edge_list.reshape(2, E)], axis=0
    ).astype(jnp.int32)                       # (3, E)
    ew = edge_weight.reshape(K, 1).astype(jnp.float32)

    cost = pl.CostEstimate(
        flops=2 * N * E * n_pad + 2 * H * N * n_pad + 2 * K * E + 8 * E,
        transcendentals=E,
        bytes_accessed=(ew.size + idx.size + x.size + H * n_pad) * 4,
    )

    vmem = pl.BlockSpec(memory_space=pltpu.MemorySpace.VMEM)
    out_padded = pl.pallas_call(
        spgnn_kernel,
        out_shape=jax.ShapeDtypeStruct((H, n_pad), jnp.float32),
        in_specs=[vmem, vmem, vmem],
        out_specs=vmem,
        cost_estimate=cost,
    )(ew, idx, x.astype(jnp.float32))
    return out_padded[:, :N]


def ref_forward(x, edge_list, edge2id, edge_weight):
    """Pure-JAX reference of the PyTorch forward."""
    src, tgt = edge_list[0], edge_list[1]
    n = x.shape[1]
    w = edge_weight[edge2id]
    exp_v = jnp.exp(w - jnp.max(w))
    exp_sum = jax.ops.segment_sum(exp_v, src, num_segments=n) + 1e-10
    alpha = exp_v / exp_sum[src]
    mat = x.T                                    # (N, H)
    contrib = alpha[:, None] * mat[tgt]          # (E, H)
    out = jax.ops.segment_sum(contrib, src, num_segments=n)
    return out.T                                 # (H, N)


if __name__ == "__main__":
    hidden_size = 32
    node_num = 8        # == label_num
    edge_num = 24       # size of the edge_weight parameter
    n_edges = 16        # sampled edges

    key = jax.random.PRNGKey(0)
    k1, k2, k3 = jax.random.split(key, 3)
    x = jax.random.normal(k1, (hidden_size, node_num), dtype=jnp.float32)
    edge_list = jax.random.randint(k2, (2, n_edges), 0, node_num, dtype=jnp.int32)
    edge2id = jax.random.randint(k3, (n_edges,), 0, edge_num, dtype=jnp.int32)
    # nn.Parameter(torch.ones(edge_num)) — deterministic init per the module.
    edge_weight = jnp.ones((edge_num,), dtype=jnp.float32)

    out = spgnn_forward(x, edge_list, edge2id, edge_weight)
    out = jax.block_until_ready(out)

    ref = ref_forward(x, edge_list, edge2id, edge_weight)
    assert out.shape == (hidden_size, node_num)
    assert jnp.allclose(out, ref, atol=1e-5, rtol=1e-5), "mismatch vs JAX reference"
    print("KERNEL_OK")
</pallas_src>

<mosaic_0001>
module attributes {stable_mosaic.version = 11 : i64} {
  func.func @spgnn_kernel(%arg0: memref<24x1xf32, #tpu.memory_space<vmem>>, %arg1: memref<3x16xi32, #tpu.memory_space<vmem>>, %arg2: memref<32x8xf32, #tpu.memory_space<vmem>>, %arg3: memref<32x128xf32, #tpu.memory_space<vmem>>) attributes {dimension_semantics = [], scalar_prefetch = 0 : i64, scratch_operands = 0 : i64, tpu.core_type = #tpu.core_type<tc>} {
    %c0 = arith.constant 0 : index
    %c0_0 = arith.constant 0 : index
    %0 = vector.load %arg1[%c0, %c0_0] : memref<3x16xi32, #tpu.memory_space<vmem>>, vector<3x16xi32>
    %1 = vector.extract_strided_slice %0 {offsets = [0, 0], sizes = [1, 16], strides = [1, 1]} : vector<3x16xi32> to vector<1x16xi32>
    %2 = vector.extract_strided_slice %0 {offsets = [1, 0], sizes = [1, 16], strides = [1, 1]} : vector<3x16xi32> to vector<1x16xi32>
    %3 = vector.extract_strided_slice %0 {offsets = [2, 0], sizes = [1, 16], strides = [1, 1]} : vector<3x16xi32> to vector<1x16xi32>
    %4 = tpu.iota {dimensions = array<i32: 0>} : vector<24x16xi32>
    %5 = vector.broadcast %1 : vector<1x16xi32> to vector<24x16xi32>
    %6 = arith.cmpi eq, %4, %5 : vector<24x16xi32>
    %c0_1 = arith.constant 0 : index
    %c0_2 = arith.constant 0 : index
    %7 = vector.load %arg0[%c0_1, %c0_2] : memref<24x1xf32, #tpu.memory_space<vmem>>, vector<24x1xf32>
    %cst = arith.constant 0.000000e+00 : f32
    %8 = vector.shape_cast %7 : vector<24x1xf32> to vector<24x1xf32>
    %9 = vector.broadcast %8 : vector<24x1xf32> to vector<24x16xf32>
    %10 = vector.broadcast %cst : f32 to vector<24x16xf32>
    %11 = arith.select %6, %9, %10 : vector<24x16xi1>, vector<24x16xf32>
    %cst_3 = arith.constant dense<0.000000e+00> : vector<16xf32>
    %12 = vector.multi_reduction <add>, %11, %cst_3 [0] : vector<24x16xf32> to vector<16xf32>
    %13 = vector.shape_cast %12 : vector<16xf32> to vector<1x16xf32>
    %14 = vector.shape_cast %13 : vector<1x16xf32> to vector<1x1x16xf32>
    %cst_4 = arith.constant dense<0xFF800000> : vector<1xf32>
    %15 = vector.multi_reduction <maximumf>, %14, %cst_4 [1, 2] : vector<1x1x16xf32> to vector<1xf32>
    %16 = vector.shape_cast %15 : vector<1xf32> to vector<1x1x1xf32>
    %17 = vector.extract %16[0, 0, 0] : f32 from vector<1x1x1xf32>
    %18 = vector.broadcast %17 : f32 to vector<1x16xf32>
    %19 = arith.subf %13, %18 : vector<1x16xf32>
    %20 = math.exp %19 : vector<1x16xf32>
    %21 = tpu.iota {dimensions = array<i32: 0>} : vector<8x16xi32>
    %22 = vector.broadcast %3 : vector<1x16xi32> to vector<8x16xi32>
    %23 = arith.cmpi eq, %21, %22 : vector<8x16xi32>
    %24 = arith.extui %23 : vector<8x16xi1> to vector<8x16xi32>
    %25 = arith.sitofp %24 : vector<8x16xi32> to vector<8x16xf32>
    %26 = tpu.iota {dimensions = array<i32: 0>} : vector<128x16xi32>
    %27 = vector.broadcast %2 : vector<1x16xi32> to vector<128x16xi32>
    %28 = arith.cmpi eq, %26, %27 : vector<128x16xi32>
    %29 = arith.extui %28 : vector<128x16xi1> to vector<128x16xi32>
    %30 = arith.sitofp %29 : vector<128x16xi32> to vector<128x16xf32>
    %31 = vector.broadcast %20 : vector<1x16xf32> to vector<8x16xf32>
    %32 = arith.mulf %25, %31 : vector<8x16xf32>
    %cst_5 = arith.constant dense<0.000000e+00> : vector<8x128xf32>
    %33 = tpu.matmul %32, %30, %cst_5 {dimension_numbers = #tpu.dot_dimension_numbers<[1], [1], [0], [0], [0, 0, 1, 0], [], []>} : vector<8x16xf32>, vector<128x16xf32>, vector<8x128xf32> -> vector<8x128xf32>
    %cst_6 = arith.constant dense<0.000000e+00> : vector<128xf32>
    %34 = vector.multi_reduction <add>, %33, %cst_6 [0] : vector<8x128xf32> to vector<128xf32>
    %35 = vector.shape_cast %34 : vector<128xf32> to vector<1x128xf32>
    %cst_7 = arith.constant 1.000000e-10 : f32
    %36 = vector.broadcast %cst_7 : f32 to vector<1x128xf32>
    %37 = arith.addf %35, %36 : vector<1x128xf32>
    %cst_8 = arith.constant 1.000000e+00 : f32
    %38 = vector.broadcast %cst_8 : f32 to vector<1x128xf32>
    %39 = arith.divf %38, %37 : vector<1x128xf32>
    %c0_9 = arith.constant 0 : index
    %c0_10 = arith.constant 0 : index
    %40 = vector.load %arg2[%c0_9, %c0_10] : memref<32x8xf32, #tpu.memory_space<vmem>>, vector<32x8xf32>
    %cst_11 = arith.constant dense<0.000000e+00> : vector<32x128xf32>
    %41 = tpu.matmul %40, %33, %cst_11 {dimension_numbers = #tpu.dot_dimension_numbers<[1], [0], [0], [1], [0, 0, 1, 1], [], []>} : vector<32x8xf32>, vector<8x128xf32>, vector<32x128xf32> -> vector<32x128xf32>
    %42 = vector.broadcast %39 : vector<1x128xf32> to vector<32x128xf32>
    %43 = arith.mulf %41, %42 : vector<32x128xf32>
    %c0_12 = arith.constant 0 : index
    %c0_13 = arith.constant 0 : index
    %44 = vector.load %arg3[%c0_12, %c0_13] : memref<32x128xf32, #tpu.memory_space<vmem>>, vector<32x128xf32>
    tpu.vector_store %arg3[%c0_12, %c0_13], %43 {strides = array<i32>} : memref<32x128xf32, #tpu.memory_space<vmem>>, vector<32x128xf32>,
    return
  }
}

</mosaic_0001>

<bundles_post_ra>
// kernel: tpu_custom_call.1
= control target key start
LH: loop header
LB: loop body
LE: loop exit
PB: predicated region body
PF: predicated region fallthrough
CT: control target
= control target key end

     0   :  { %v536_v2 = vmov 0   ;;  %s702_s0 = inlined_call_operand.vmem [shape: f32[24,1], index: 0, kind: input, shape index: {}]   ;;  %s703_s1 = inlined_call_operand.vmem [shape: s32[3,16], index: 1, kind: input, shape index: {}]   ;;  %s704_s2 = inlined_call_operand.vmem [shape: f32[32,8], index: 2, kind: input, shape index: {}]   ;;  %s705_s3 = inlined_call_operand.hbm [shape: f32[32,128], index: 3, kind: output, shape index: {}]  }
   0x1   :  { %v27_v0 = vld [vmem:[%s702_s0] sm:$0xff]  ;;  %v29_v1 = vld [vmem:[%s702_s0 + $0x10] sm:$0xff]  ;;  %508 = vset.pattern.permute.xlu0 %v536_v2  ;;  %509 = vset.pattern.permute.xlu1 %v536_v2 }
   0x2   :  { %8 = vsyncpa [#allocation3], 0  ;;  %32 = vperm.xlu0 %508, %v27_v0   ;;  %42 = vperm.xlu1 %509, %v29_v1   ;;  %v28_v3 = vld [vmem:[%s702_s0 + $0x8] sm:$0xff]  ;;  %v16_v4 = vlaneseq  ;;  %v577_v7 = vld [vmem:[%s703_s1] sm:$0x7]  ;;  %vm48_vm3 = vcmask 130048  }
   0x3   :  { %v537_v33 = vmov 0.0   ;;  %s539_s27 = smov [#allocation2]  }
   0x4   :  { %v571_v5 = vshrl.u32 %v16_v4, 7  ;;  %457 = vmatprep.subr.mxu0 %v537_v33  ;;  %s386_s28 = sshll.u32 %s539_s27, 4  ;;  %s387_s28 = int_to_ptr.vmem [resolvable:$true] %s386_s28 }
   0x5   :  { %p519_p1 = scmp.lt.s32.totalorder %s387_s28, %s387_s28 }
   0x6   :  { %37 = vperm.xlu0 %508, %v28_v3   ;;  %v22_v6 = vsub.s32 0, %v571_v5  ;;  %v581_v9 = vadd.s32 16, %v571_v5  ;;  %v584_v10 = vadd.s32 8, %v571_v5  ;;  %v90_v29 = vsub.s32 1, %v571_v5 }
   0x7   :  { %v87_v31 = vadd.s32 120, %v571_v5  ;;  %v86_v32 = vadd.s32 112, %v571_v5  ;;  %v85_v34 = vadd.s32 104, %v571_v5  ;;  %v84_v37 = vadd.s32 96, %v571_v5 }
   0x8   :  { %v23_v8 = vrot.slane %v577_v7, %v22_v6  ;;  %v598_v30 = vrot.slane %v577_v7, %v90_v29  ;;  %v83_v39 = vadd.s32 88, %v571_v5  ;;  %v82_v41 = vadd.s32 80, %v571_v5  ;;  %v271_v6 = vld [vmem:[%s704_s2] sm:$0xff] }
   0x9   :  { %v81_v43 = vadd.s32 72, %v571_v5  ;;  %v80_v45 = vadd.s32 64, %v571_v5  ;;  %v79_v47 = vadd.s32 56, %v571_v5  ;;  %v78_v49 = vadd.s32 48, %v571_v5 }
   0xa   :  { %vm24_vm0 = vcmp.eq.s32.totalorder %v571_v5, %v23_v8  ;;  %vm26_vm1 = vcmp.eq.s32.totalorder %v581_v9, %v23_v8  ;;  %vm25_vm2 = vcmp.eq.s32.totalorder %v584_v10, %v23_v8  ;;  %vm107_vm4 = vcmp.eq.s32.totalorder %v87_v31, %v598_v30  ;;  %v272_v8 = vld [vmem:[%s704_s2 + $0x8] sm:$0xff] }
   0xb   :  { %vm106_vm5 = vcmp.eq.s32.totalorder %v86_v32, %v598_v30  ;;  %v413_v35 = vsel %vm107_vm4, 1.0, %v537_v33  ;;  %vm105_vm6 = vcmp.eq.s32.totalorder %v85_v34, %v598_v30  ;;  %vm104_vm7 = vcmp.eq.s32.totalorder %v84_v37, %v598_v30 }
   0xc   :  { %458 = vmatpush3.xpose.msk.msra.mxu0 %vm48_vm3, %v413_v35  ;;  %v412_v36 = vsel %vm106_vm5, 1.0, %v537_v33  ;;  %v411_v38 = vsel %vm105_vm6, 1.0, %v537_v33  ;;  %v410_v40 = vsel %vm104_vm7, 1.0, %v537_v33  ;;  %vm103_vm8 = vcmp.eq.s32.totalorder %v83_v39, %v598_v30 }
   0xd   :  { %459 = vmatprep.subr.mxu0 %v537_v33  ;;  %v409_v42 = vsel %vm103_vm8, 1.0, %v537_v33  ;;  %vm102_vm9 = vcmp.eq.s32.totalorder %v82_v41, %v598_v30  ;;  %vm101_vm10 = vcmp.eq.s32.totalorder %v81_v43, %v598_v30  ;;  %vm100_vm11 = vcmp.eq.s32.totalorder %v80_v45, %v598_v30 }
   0xe   :  { %v408_v44 = vsel %vm102_vm9, 1.0, %v537_v33  ;;  %v407_v46 = vsel %vm101_vm10, 1.0, %v537_v33  ;;  %v406_v48 = vsel %vm100_vm11, 1.0, %v537_v33  ;;  %vm99_vm12 = vcmp.eq.s32.totalorder %v79_v47, %v598_v30 }
   0xf   :  { %v405_v50 = vsel %vm99_vm12, 1.0, %v537_v33  ;;  %vm98_vm13 = vcmp.eq.s32.totalorder %v78_v49, %v598_v30  ;;  %v77_v51 = vadd.s32 40, %v571_v5  ;;  %v76_v54 = vadd.s32 32, %v571_v5 }
  0x10   :  { %460 = vmatpush3.xpose.msk.msra.mxu0 %vm48_vm3, %v412_v36  ;;  %v404_v52 = vsel %vm98_vm13, 1.0, %v537_v33  ;;  %v70_v55 = vsub.s32 2, %v571_v5  ;;  %v75_v57 = vadd.s32 24, %v571_v5  ;;  %vm538_vm4 = vmmov 0  }
  0x11   :  { %461 = vmatprep.subr.mxu0 %v537_v33  ;;  %vm97_vm14 = vcmp.eq.s32.totalorder %v77_v51, %v598_v30  ;;  %vm96_vm15 = vcmp.eq.s32.totalorder %v76_v54, %v598_v30  ;;  %489 = vmatprep.mubr.msk.f32.mxu0 %vm538_vm4, %v537_v33  ;;  %vm93_vm6 = vcmp.eq.s32.totalorder %v584_v10, %v598_v30  ;;  %vm275_vm7 = vcmask 64512  }
  0x12   :  { %v403_v53 = vsel %vm97_vm14, 1.0, %v537_v33  ;;  %v402_v56 = vsel %vm96_vm15, 1.0, %v537_v33  ;;  %v71_v58 = vrot.slane %v577_v7, %v70_v55  ;;  %v399_v63 = vsel %vm93_vm6, 1.0, %v537_v33  ;;  %494 = vmatprep.mubr.msk.f32.mxu1 %vm275_vm7, %v271_v6 }
  0x14   :  { %462 = vmatpush3.xpose.msk.msra.mxu0 %vm48_vm3, %v411_v38  ;;  %vm72_vm5 = vcmp.eq.s32.totalorder %v571_v5, %v71_v58 }
  0x15   :  { %463 = vmatprep.subr.mxu0 %v537_v33  ;;  %v397_v62 = vsel %vm72_vm5, 1.0, %v537_v33 }
  0x18   :  { %464 = vmatpush3.xpose.msk.msra.mxu0 %vm48_vm3, %v410_v40 }
  0x19   :  { %465 = vmatprep.subr.mxu0 %v537_v33 }
  0x1c   :  { %466 = vmatpush3.xpose.msk.msra.mxu0 %vm48_vm3, %v409_v42 }
  0x1d   :  { %467 = vmatprep.subr.mxu0 %v537_v33 }
  0x20   :  { %468 = vmatpush3.xpose.msk.msra.mxu0 %vm48_vm3, %v408_v44 }
  0x21   :  { %469 = vmatprep.subr.mxu0 %v537_v33 }
  0x24   :  { %470 = vmatpush3.xpose.msk.msra.mxu0 %vm48_vm3, %v407_v46 }
  0x25   :  { %471 = vmatprep.subr.mxu0 %v537_v33 }
  0x28   :  { %472 = vmatpush3.xpose.msk.msra.mxu0 %vm48_vm3, %v406_v48 }
  0x29   :  { %473 = vmatprep.subr.mxu0 %v537_v33 }
  0x2c   :  { %474 = vmatpush3.xpose.msk.msra.mxu0 %vm48_vm3, %v405_v50 }
  0x2d   :  { %475 = vmatprep.subr.mxu0 %v537_v33 }
  0x30   :  { %476 = vmatpush3.xpose.msk.msra.mxu0 %vm48_vm3, %v404_v52 }
  0x31   :  { %477 = vmatprep.subr.mxu0 %v537_v33 }
  0x34   :  { %478 = vmatpush3.xpose.msk.msra.mxu0 %vm48_vm3, %v403_v53 }
  0x35   :  { %479 = vmatprep.subr.mxu0 %v537_v33 }
  0x38   :  { %480 = vmatpush3.xpose.msk.msra.mxu0 %vm48_vm3, %v402_v56 }
  0x39   :  { %481 = vmatprep.subr.mxu0 %v537_v33 }
  0x7d   :  { %v33_v11 = vpop.permute.xlu0 %32  ;;  %v43_v12 = vpop.permute.xlu1 %42 }
  0x7e   :  { %v45_v13 = vsel %vm24_vm0, %v33_v11, 0.0  ;;  %v47_v14 = vsel %vm26_vm1, %v43_v12, 0.0  ;;  %vm95_vm0 = vcmp.eq.s32.totalorder %v75_v57, %v598_v30  ;;  %vm94_vm1 = vcmp.eq.s32.totalorder %v581_v9, %v598_v30  ;;  %v273_v9 = vld [vmem:[%s704_s2 + $0x10] sm:$0xff]  ;;  %v274_v11 = vld [vmem:[%s704_s2 + $0x18] sm:$0xff]  ;;  %s514_s2 = scalar_lea.vmem %s387_s28, 512 }
  0x7f   :  { %v49_v17 = vsel %vm48_vm3, %v45_v13, 0.0  ;;  %v52_v19 = vsel %vm48_vm3, %v47_v14, 0.0  ;;  %v401_v59 = vsel %vm95_vm0, 1.0, %v537_v33  ;;  %v400_v61 = vsel %vm94_vm1, 1.0, %v537_v33  ;;  %p515_p0 = scmp.ne.s32.totalorder %s387_s28, %s514_s2  ;;  %p520_p2 = scmp.lt.s32.totalorder %s514_s2, %s514_s2 }
  0x80   :  { %482 = vmatpush3.xpose.msk.msra.mxu0 %vm48_vm3, %v401_v59 }
  0x81   :  { %v38_v15 = vpop.permute.xlu0 %37  ;;  %483 = vmatprep.subr.mxu0 %v537_v33  ;;  %p521_p3 = por %p520_p2, %p519_p1 }
  0x82   :  { %v46_v16 = vsel %vm25_vm2, %v38_v15, 0.0  ;;  %vm92_vm2 = vcmp.eq.s32.totalorder %v571_v5, %v598_v30 }
  0x83   :  { %v50_v18 = vsel %vm48_vm3, %v46_v16, 0.0  ;;  %v398_v60 = vsel %vm92_vm2, 1.0, %v537_v33  ;;  %p522_p4 = pnand %p521_p3, %p515_p0 }
  0x84   :  { %v51_v20 = vadd.f32 %v50_v18, %v49_v17  ;;  %484 = vmatpush3.xpose.msk.msra.mxu0 %vm48_vm3, %v400_v61 }
  0x85   :  { %485 = vmatprep.subr.mxu0 %v537_v33 }
  0x86   :  { %v53_v21 = vadd.f32 %v52_v19, %v51_v20 }
  0x88   :  { %v54_v22 = vrot.slane %v53_v21, 4  ;;  %486 = vmatpush3.xpose.msk.msra.mxu0 %vm48_vm3, %v399_v63 }
  0x89   :  { %487 = vmatprep.subr.mxu0 %v537_v33 }
  0x8a   :  { %v55_v23 = vadd.f32 %v54_v22, %v53_v21 }
  0x8c   :  { %v56_v24 = vrot.slane %v55_v23, 2  ;;  %488 = vmatpush3.xpose.msk.msra.mxu0 %vm48_vm3, %v398_v60 }
  0x8e   :  { %v57_v25 = vadd.f32 %v56_v24, %v55_v23 }
  0x90   :  { %v58_v26 = vrot.slane %v57_v25, 1 }
  0x92   :  { %v592_v27 = vadd.f32 %v58_v26, %v57_v25 }
  0x94   :  { %v60_v28 = vsel %vm48_vm3, %v592_v27, -inf }
  0x95   :  { %61 = vmax.xlane.f32.xlu1 %v60_v28 }
 0x11e   :  { %v62_v0 = vpop.xlane.xlu1 %61 }
 0x11f   :  { %500 = vpush %v62_v0 }
 0x150   :  { %s501_s0 = spop %500 }
 0x151   :  { %v64_v1 = vstv %s501_s0 }
 0x152   :  { %v65_v2 = vsub.f32 %v592_v27, %v64_v1 }
 0x154   :  { %v66_v3 = vmul.f32 1.442695, %v65_v2 }
 0x156   :  { %510 = vpow2.f32 %v66_v3 }
 0x163   :  { %v511_v4 = vpop.eup %510 }
 0x164   :  { %v140_v5 = vmul.f32 %v511_v4, %v397_v62 }
 0x166   :  { %490 = vmatmul.mubr.msk.f32.vlgmr.msra.gmra.mxu0 %vm48_vm3, %v140_v5 }
 0x226   :  { %v258_v7 = vpop.f32.mrf.mxu0 }
 0x227   :  { %492 = vmatprep.subr.mxu1 %v258_v7  ;;  %v262_v12 = vrot.slane %v258_v7, 4 }
 0x228   :  { %v491_v10 = vpop.f32.mrf.mxu0  ;;  %493 = vmatpush3.msra.mxu1 %v258_v7 }
 0x229   :  { %495 = vmatmul.mubr.msk.f32.vlgmr.msra.gmra.mxu1 %vm275_vm7, %v272_v8  ;;  %v263_v13 = vadd.f32 %v262_v12, %v258_v7 }
 0x22a   :  { %497 = vmatprep.mubr.msk.f32.mxu1 %vm275_vm7, %v273_v9 }
 0x22b   :  { %v264_v14 = vrot.slane %v263_v13, 2 }
 0x22d   :  { %498 = vmatmul.mubr.msk.f32.gmra.mxu1 %vm275_vm7, %v274_v11  ;;  %v265_v15 = vadd.f32 %v264_v14, %v263_v13 }
 0x22f   :  { %v266_v16 = vrot.slane %v265_v15, 1 }
 0x231   :  { %v267_v17 = vadd.f32 %v266_v16, %v265_v15 }
 0x233   :  { %v268_v18 = vadd.f32 1e-10, %v267_v17 }
 0x235   :  { %512 = vrcp.f32 %v268_v18 }
 0x242   :  { %v513_v19 = vpop.eup %512 }
 0x2e9   :  { %v496_v20 = vpop.f32.mrf.mxu1 }
 0x2ea   :  { %v374_v21 = vmul.f32 %v513_v19, %v496_v20 }
 0x2eb   :  { %v354_v22 = vpop.f32.mrf.mxu1 }
 0x2ec   :  { %378 = vst [vmem:[#allocation2 + $0x8] sm:$0xff] %v374_v21  ;;  %v373_v23 = vmul.f32 %v513_v19, %v354_v22 }
 0x2ed   :  { %v499_v24 = vpop.f32.mrf.mxu1 }
 0x2ee   :  { %377 = vst [vmem:[#allocation2] sm:$0xff] %v373_v23  ;;  %v376_v25 = vmul.f32 %v513_v19, %v499_v24 }
 0x2ef   :  { %v364_v26 = vpop.f32.mrf.mxu1 }
 0x2f0   :  { %380 = vst [vmem:[#allocation2 + $0x18] sm:$0xff] %v376_v25  ;;  %v375_v27 = vmul.f32 %v513_v19, %v364_v26 }
 0x2f2   :  { %379 = vst [vmem:[#allocation2 + $0x10] sm:$0xff] %v375_v27 }
 0x2f3   :  { %525 = shalt.err (!%p522_p4)
}
 0x2f4   :  { %s540_s29 = smov 128   ;;  %s541_s30 = smov 8  }
 0x2f5   :  { %392 = dma.vmem_to_hbm [thread:$0]  %s387_s28, 512, %s705_s3, [#allocation3], %s540_s29, %s540_s29, %s541_s30  }
 0x2f6   :  { %534 = dma.done.wait [#allocation3], 512  }
 0x2f7   :  { %535 = vsyncadd [#allocation3], 4294966784 }
 0x2f8   :  { %396 = vsyncpa [#allocation3], 1 }

</bundles_post_ra>
